<compile_context>
chip_gen: v5e
topology: v5e:2x2
jax: 0.10.0
libtpu: 0.0.40
codegen_flags: <defaults>
</compile_context>

<pallas_src>
import jax
import jax.numpy as jnp
from jax.experimental import pallas as pl
from jax.experimental.pallas import tpu as pltpu


# --------------------------------------------------------------------------- pe table
def _build_pe(pad_size: int, embed: int) -> jnp.ndarray:
    """Sinusoidal table matching torch: pe[pos,i] = pos / 10000**((i//2)*2/embed); sin even, cos odd."""
    pos = jnp.arange(pad_size, dtype=jnp.float32)[:, None]          # [pad_size, 1]
    i = jnp.arange(embed, dtype=jnp.float32)[None, :]               # [1, embed]
    div = jnp.power(10000.0, jnp.floor(i / 2.0) * 2.0 / float(embed))
    angles = pos / div
    even = (jnp.arange(embed) % 2 == 0)[None, :]
    return jnp.where(even, jnp.sin(angles), jnp.cos(angles)).astype(jnp.float32)


# --------------------------------------------------------------------------- layout helpers
def _fold_factor(pad_size: int, embed: int) -> int:
    """Fold `fold` consecutive rows into the lane axis so the last dim is a multiple of 128.

    Bit-identical to the unfolded add: x and pe are folded the same (row-major) way and the
    broadcast is only over batch.
    """
    if embed % 128 == 0:
        return 1
    for fold in range(2, pad_size + 1):
        if pad_size % fold == 0 and (fold * embed) % 128 == 0:
            return fold
    return 1  # fallback: full-extent last dim is still a legal block shape (masked stores)


def _vmem_budget():
    """(tile-footprint budget, scoped vmem_limit ceiling), generation-aware."""
    try:
        cap = int(pltpu.get_tpu_info().vmem_capacity_bytes)
    except Exception:
        cap = 64 << 20                      # conservative fallback (v7x-sized)
    if cap >= (100 << 20):                  # v5e / v6e: 128 MiB physical VMEM
        budget = min(int(cap * 0.45), 56 << 20)
        limit_cap = min(int(cap * 0.75), 96 << 20)
    else:                                   # v7x: 64 MiB per TC (or unknown/small)
        budget = 26 << 20
        limit_cap = 52 << 20
    return budget, limit_cap


def _largest_divisor_le(n: int, cap: int) -> int:
    cap = max(1, min(cap, n))
    for d in range(cap, 0, -1):
        if n % d == 0:
            return d
    return 1


def _row_tile(p2: int, e2: int, itemsize: int, budget: int) -> int:
    """Row tile sized by HBM bytes/step (target ~8 MiB) within the VMEM budget."""
    m = max(8, 32 // max(itemsize, 1))                    # sublane packing multiple (8/16/32)
    per_row_vmem = 2 * e2 * (itemsize + 4 + 4)            # double-buffered x + out + pe
    max_rows = max(m, budget // max(per_row_vmem, 1))
    per_row_hbm = e2 * (itemsize + 4)                     # x read + f32 write (pe amortized)
    target = pl.cdiv(8 << 20, per_row_hbm)
    tr = min(p2, max_rows, max(target, m))
    tr = max(m, (tr // m) * m)
    if tr >= p2:
        return p2                                         # full extent: always legal
    for cand in range(tr, m - 1, -m):                     # prefer a divisor of p2
        if p2 % cand == 0:
            return cand
    return tr                                             # cdiv grid + masked remainder block


# --------------------------------------------------------------------------- kernels
def _pos_enc_kernel_rows(x_ref, pe_ref, o_ref):
    # x_ref / pe_ref / o_ref: (TR, E2) 2-D tiles (batch dim squeezed).
    o_ref[...] = x_ref[...].astype(jnp.float32) + pe_ref[...]
    # dropout in eval mode is identity -> nothing else to do.


def _pos_enc_kernel_batched(x_ref, pe_ref, o_ref):
    # x_ref / o_ref: (TB, P2, E2); pe_ref: (P2, E2) resident, broadcast over the batch block.
    o_ref[...] = x_ref[...].astype(jnp.float32) + pe_ref[...][None, :, :]


# --------------------------------------------------------------------------- wrapper
def positional_encoding(x: jnp.ndarray, pe: jnp.ndarray) -> jnp.ndarray:
    """x: [batch, pad_size, embed], pe: [pad_size, embed] -> float32 [batch, pad_size, embed]."""
    batch, pad_size, embed = x.shape
    assert pe.shape == (pad_size, embed)
    itemsize = x.dtype.itemsize

    # lane-dense last dim: fold consecutive rows into the lane axis
    fold = _fold_factor(pad_size, embed)
    p2, e2 = pad_size // fold, embed * fold
    x2 = x.reshape(batch, p2, e2)
    pe2 = pe.astype(jnp.float32).reshape(p2, e2)

    budget, limit_cap = _vmem_budget()

    # scheduler hint: x read + f32 write + pe read ONCE (residency / inner-batch reuse below)
    n_elem = batch * pad_size * embed
    cost = pl.CostEstimate(
        flops=n_elem,
        transcendentals=0,
        bytes_accessed=n_elem * itemsize + n_elem * 4 + p2 * e2 * 4,
    )

    per_row_hbm = e2 * (itemsize + 4)
    full_seq_hbm = p2 * per_row_hbm                       # HBM bytes for one batch element
    target_step_bytes = 8 << 20

    per_b_vmem = 2 * p2 * e2 * (itemsize + 4)             # double-buffered x + out, whole seq
    pe_resident_vmem = 2 * p2 * e2 * 4

    use_batched = (
        batch > 1
        and full_seq_hbm < target_step_bytes
        and per_b_vmem + pe_resident_vmem <= budget
    )

    if use_batched:
        # Short sequences: block several batch elements per step; pe fully resident (index const).
        tb_vmem_max = max(1, (budget - pe_resident_vmem) // max(per_b_vmem, 1))
        tb_target = max(1, pl.cdiv(target_step_bytes, max(full_seq_hbm, 1)))
        tb = _largest_divisor_le(batch, min(tb_vmem_max, tb_target))
        grid = (batch // tb,)
        in_specs = [
            pl.BlockSpec((tb, p2, e2), lambda b: (b, 0, 0)),
            pl.BlockSpec((p2, e2), lambda b: (0, 0)),      # constant index -> DMA'd once, resident
        ]
        out_specs = pl.BlockSpec((tb, p2, e2), lambda b: (b, 0, 0))
        dims = ("parallel",)
        kernel = _pos_enc_kernel_batched
        footprint = 2 * tb * p2 * e2 * (itemsize + 4) + pe_resident_vmem
    else:
        # Long sequences: tile rows; grid = (num_r, batch) with batch innermost & "arbitrary"
        # so the pe row-tile index is unchanged across consecutive steps -> re-DMA skipped.
        tr = _row_tile(p2, e2, itemsize, budget)
        num_r = pl.cdiv(p2, tr)
        grid = (num_r, batch)
        in_specs = [
            pl.BlockSpec((pl.Squeezed(), tr, e2), lambda r, b: (b, r, 0)),
            pl.BlockSpec((tr, e2), lambda r, b: (r, 0)),   # constant over inner b -> reuse
        ]
        out_specs = pl.BlockSpec((pl.Squeezed(), tr, e2), lambda r, b: (b, r, 0))
        dims = ("parallel", "arbitrary")                   # rows shard across v7x cores
        kernel = _pos_enc_kernel_rows
        footprint = 2 * tr * e2 * (itemsize + 4 + 4)

    vmem_limit = int(min(max(footprint + (8 << 20), 32 << 20), limit_cap))

    out2 = pl.pallas_call(
        kernel,
        out_shape=jax.ShapeDtypeStruct((batch, p2, e2), jnp.float32),
        grid_spec=pltpu.PrefetchScalarGridSpec(
            num_scalar_prefetch=0,
            grid=grid,
            in_specs=in_specs,
            out_specs=out_specs,
        ),
        compiler_params=pltpu.CompilerParams(
            dimension_semantics=dims,
            vmem_limit_bytes=vmem_limit,
        ),
        cost_estimate=cost,
    )(x2, pe2)

    return out2.reshape(batch, pad_size, embed)


# --------------------------------------------------------------------------- test
if __name__ == "__main__":
    key = jax.random.PRNGKey(0)

    batch, pad_size, embed = 2, 8, 32
    x = jax.random.normal(key, (batch, pad_size, embed), dtype=jnp.float32)

    pe = _build_pe(pad_size, embed)

    out = positional_encoding(x, pe)
    out = jax.block_until_ready(out)

    # sanity check against plain-JAX reference (eval-mode dropout = identity)
    ref = x.astype(jnp.float32) + pe[None, :, :]
    assert out.shape == (batch, pad_size, embed)
    assert out.dtype == jnp.float32
    assert bool(jnp.allclose(out, ref, atol=1e-6, rtol=1e-6))

    print("KERNEL_OK")
</pallas_src>

<mosaic_0001>
module attributes {stable_mosaic.version = 11 : i64} {
  func.func @_pos_enc_kernel_batched(%arg0: i32, %arg1: memref<2x2x128xf32, #tpu.memory_space<vmem>>, %arg2: memref<2x128xf32, #tpu.memory_space<vmem>>, %arg3: memref<2x2x128xf32, #tpu.memory_space<vmem>>) attributes {dimension_semantics = [#tpu.dimension_semantics<parallel>], iteration_bounds = array<i64: 1>, scalar_prefetch = 0 : i64, scratch_operands = 0 : i64, tpu.core_type = #tpu.core_type<tc>, window_params = [{transform_indices = @transform_0, window_bounds = array<i64: 2, 2, 128>}, {pipeline_mode = #tpu.pipeline_mode<synchronous>, transform_indices = @transform_1, window_bounds = array<i64: 2, 128>}, {transform_indices = @transform_2, window_bounds = array<i64: 2, 2, 128>}]} {
    %c0 = arith.constant 0 : index
    %c0_0 = arith.constant 0 : index
    %c0_1 = arith.constant 0 : index
    %0 = vector.load %arg1[%c0, %c0_0, %c0_1] : memref<2x2x128xf32, #tpu.memory_space<vmem>>, vector<2x2x128xf32>
    %c0_2 = arith.constant 0 : index
    %c0_3 = arith.constant 0 : index
    %1 = vector.load %arg2[%c0_2, %c0_3] : memref<2x128xf32, #tpu.memory_space<vmem>>, vector<2x128xf32>
    %2 = vector.shape_cast %1 : vector<2x128xf32> to vector<1x2x128xf32>
    %3 = vector.broadcast %2 : vector<1x2x128xf32> to vector<2x2x128xf32>
    %4 = arith.addf %0, %3 : vector<2x2x128xf32>
    %c0_4 = arith.constant 0 : index
    %c0_5 = arith.constant 0 : index
    %c0_6 = arith.constant 0 : index
    %5 = vector.load %arg3[%c0_4, %c0_5, %c0_6] : memref<2x2x128xf32, #tpu.memory_space<vmem>>, vector<2x2x128xf32>
    tpu.vector_store %arg3[%c0_4, %c0_5, %c0_6], %4 {strides = array<i32>} : memref<2x2x128xf32, #tpu.memory_space<vmem>>, vector<2x2x128xf32>,
    return
  }
  func.func @transform_0(%arg0: i32) -> (i32, i32, i32) {
    %c0_i32 = arith.constant 0 : i32
    %c0_i32_0 = arith.constant 0 : i32
    %c0_i32_1 = arith.constant 0 : i32
    return %arg0, %c0_i32, %c0_i32_0 : i32, i32, i32
  }
  func.func @transform_1(%arg0: i32) -> (i32, i32) {
    %c0_i32 = arith.constant 0 : i32
    %c0_i32_0 = arith.constant 0 : i32
    %c0_i32_1 = arith.constant 0 : i32
    return %c0_i32, %c0_i32_0 : i32, i32
  }
  func.func @transform_2(%arg0: i32) -> (i32, i32, i32) {
    %c0_i32 = arith.constant 0 : i32
    %c0_i32_0 = arith.constant 0 : i32
    %c0_i32_1 = arith.constant 0 : i32
    return %arg0, %c0_i32, %c0_i32_0 : i32, i32, i32
  }
}

</mosaic_0001>

<bundles_post_ra>
// kernel: tpu_custom_call.1
= control target key start
LH: loop header
LB: loop body
LE: loop exit
PB: predicated region body
PF: predicated region fallthrough
CT: control target
= control target key end

     0   :  { %7 = vsyncpa [#allocation3], 0  ;;  %s181_s0 = inlined_call_operand.hbm [shape: f32[2,2,128], index: 0, kind: input, shape index: {}]   ;;  %s182_s1 = inlined_call_operand.hbm [shape: f32[2,128], index: 1, kind: input, shape index: {}]   ;;  %s183_s2 = inlined_call_operand.hbm [shape: f32[2,2,128], index: 2, kind: output, shape index: {}]  }
   0x1   :  { %8 = vsyncpa [#allocation6], 0 }
   0x2   :  { %9 = vsyncpa [#allocation4], 0  ;;  %s14_s11 = sshll.u32 %s181_s0, 4  ;;  %s152_s12 = smov [#allocation2]   ;;  %s15_s11 = int_to_ptr.hbm [resolvable:$true] %s14_s11 }
   0x3   :  { %s16_s13 = sshll.u32 %s152_s12, 4  ;;  %s28_s16 = sshll.u32 %s182_s1, 4  ;;  %s17_s13 = int_to_ptr.vmem [resolvable:$true] %s16_s13  ;;  %s29_s16 = int_to_ptr.hbm [resolvable:$true] %s28_s16 }
   0x4   :  { %s153_s17 = smov 32   ;;  %s154_s18 = smov 2  }
   0x5   :  { %22 = dma.hbm_to_vmem [thread:$0]  %s15_s11, 64, %s17_s13, [#allocation3], %s153_s17, %s153_s17, %s154_s18  }
   0x6   :  { %s155_s19 = smov [#allocation5]  }
   0x7   :  { %s30_s20 = sshll.u32 %s155_s19, 4  ;;  %s31_s20 = int_to_ptr.vmem [resolvable:$true] %s30_s20 }
   0x8   :  { %33 = dma.hbm_to_vmem [thread:$0]  %s29_s16, 32, %s31_s20, [#allocation6]  }
   0x9   :  { %146 = dma.done.wait [#allocation3], 64  }
   0xa   :  { %147 = vsyncadd [#allocation3], 4294967232 }
   0xb   :  { %148 = dma.done.wait [#allocation6], 32  }
   0xc   :  { %149 = vsyncadd [#allocation6], 4294967264  ;;  %s156_s0 = smov [#allocation7]   ;;  %s55_s24 = sshll.u32 %s183_s2, 4  ;;  %v42_v0 = vld [vmem:[#allocation2] sm:$0x3]  ;;  %s56_s24 = int_to_ptr.hbm [resolvable:$true] %s55_s24 }
   0xd   :  { %s53_s21 = sshll.u32 %s156_s0, 4  ;;  %v44_v1 = vld [vmem:[#allocation5] sm:$0x3]  ;;  %v43_v2 = vld [vmem:[#allocation2 + $0x2] sm:$0x3]  ;;  %s54_s21 = int_to_ptr.vmem [resolvable:$true] %s53_s21 }
   0xe   :  { %v45_v3 = vadd.f32 %v44_v1, %v42_v0  ;;  %v46_v4 = vadd.f32 %v44_v1, %v43_v2 }
  0x10   :  { %47 = vst [vmem:[#allocation7] sm:$0x3] %v45_v3 }
  0x11   :  { %48 = vst [vmem:[#allocation7 + $0x2] sm:$0x3] %v46_v4 }
  0x12   :  { %61 = dma.vmem_to_hbm [thread:$0]  %s54_s21, 64, %s56_s24, [#allocation4], %s153_s17, %s153_s17, %s154_s18  }
  0x13   :  { %150 = dma.done.wait [#allocation4], 64  }
  0x14   :  { %151 = vsyncadd [#allocation4], 4294967232 }
  0x15   :  { %66 = vsyncpa [#allocation3], 1 }
  0x16   :  { %67 = vsyncpa [#allocation6], 1 }
  0x17   :  { %68 = vsyncpa [#allocation4], 1 }

</bundles_post_ra>
